<compile_context>
chip_gen: v5e
topology: v5e:2x2
jax: 0.10.0
libtpu: 0.0.40
codegen_flags: <defaults>
</compile_context>

<pallas_src>
import jax
import jax.numpy as jnp
from jax.experimental import pallas as pl
from jax.experimental.pallas import tpu as pltpu


# Batch-tile upper bound, sized for v7x's 64 MiB VMEM (32 MiB scoped default):
# 3 activation inputs x 2 buffers x (TB x D x 4B) stays well under budget for
# D up to a few thousand.  v6e/v5e (128 MiB VMEM) tolerate larger tiles.
TB_MAX = 512


# ----------------------------------------------------------------------------
# Pallas kernel: folded reward head on one batch tile.
#   r_better = emb_better @ W_emb + emb_source @ W_src + b_eff
#   r_worse  = emb_worse  @ W_emb + emb_source @ W_src + b_eff
# ----------------------------------------------------------------------------
def _reward_head_kernel(eb_ref, ew_ref, es_ref, w_emb_ref, w_src_ref, b_ref,
                        out_ref):
    # Shared emb_source contribution: computed once per tile, reused twice.
    r_src = jnp.dot(es_ref[...], w_src_ref[...],
                    preferred_element_type=jnp.float32) + b_ref[...]
    r_better = jnp.dot(eb_ref[...], w_emb_ref[...],
                       preferred_element_type=jnp.float32) + r_src
    r_worse = jnp.dot(ew_ref[...], w_emb_ref[...],
                      preferred_element_type=jnp.float32) + r_src
    out_ref[...] = jnp.concatenate([r_better, r_worse], axis=1)  # (TB, 2)


def image_reward_forward(emb_better, emb_worse, emb_source, params):
    """ImageReward.forward given the three pooled BLIP embeddings.

    emb_*: (B, D) float32.  Returns reward: (B, 2) float32
    (column 0 = reward_better, column 1 = reward_worse).
    """
    B, D = emb_better.shape
    w1, b1, w2, b2, w3, b3, w4, b4, w5, b5 = params

    # ---- Fold the all-affine 5-layer head at trace time (exact). ----
    # W_eff: (2D, 1);  b_eff: (1, 1)
    w_eff = w1 @ w2 @ w3 @ w4 @ w5
    b_eff = (((b1 @ w2 + b2) @ w3 + b3) @ w4 + b4) @ w5 + b5
    w_emb = w_eff[:D]   # (D, 1) — applied to emb_better / emb_worse
    w_src = w_eff[D:]   # (D, 1) — applied to emb_source (shared)

    # ---- Batch tiling (pad B up to a multiple of the tile). ----
    TB = B if B <= TB_MAX else TB_MAX
    Bp = pl.cdiv(B, TB) * TB
    if Bp != B:
        pad = ((0, Bp - B), (0, 0))
        emb_better = jnp.pad(emb_better, pad)
        emb_worse = jnp.pad(emb_worse, pad)
        emb_source = jnp.pad(emb_source, pad)

    act_spec = pl.BlockSpec((TB, D), lambda i: (i, 0))
    w_spec = pl.BlockSpec((D, 1), lambda i: (0, 0))      # resident across grid
    b_spec = pl.BlockSpec((1, 1), lambda i: (0, 0))

    out = pl.pallas_call(
        _reward_head_kernel,
        out_shape=jax.ShapeDtypeStruct((Bp, 2), jnp.float32),
        grid=(Bp // TB,),
        in_specs=[act_spec, act_spec, act_spec, w_spec, w_spec, b_spec],
        out_specs=pl.BlockSpec((TB, 2), lambda i: (i, 0)),
        compiler_params=pltpu.CompilerParams(
            dimension_semantics=("parallel",)),
    )(emb_better, emb_worse, emb_source, w_emb, w_src, b_eff)

    return out[:B]


# ----------------------------------------------------------------------------
# Deterministic parameter init (matches MLP.__init__ statistics):
#   weights ~ N(0, 1/(input_size+1)), biases = 0.
# Weights stored (in_features, out_features): y = x @ W + b.
# ----------------------------------------------------------------------------
def init_mlp_params(key, input_size):
    dims = [2 * input_size, 1024, 128, 64, 16, 1]
    std = 1.0 / (input_size + 1)
    params = []
    for i in range(5):
        key, sub = jax.random.split(key)
        w = std * jax.random.normal(sub, (dims[i], dims[i + 1]),
                                    dtype=jnp.float32)
        b = jnp.zeros((1, dims[i + 1]), dtype=jnp.float32)
        params += [w, b]
    return params


if __name__ == "__main__":
    key = jax.random.PRNGKey(0)

    B = 2            # batch
    mlp_dim = 32     # config['ImageReward']['mlp_dim'] (small synthetic size)

    k_emb, k_params = jax.random.split(key)
    kb, kw, ks = jax.random.split(k_emb, 3)
    emb_better = jax.random.normal(kb, (B, mlp_dim), dtype=jnp.float32)
    emb_worse = jax.random.normal(kw, (B, mlp_dim), dtype=jnp.float32)
    emb_source = jax.random.normal(ks, (B, mlp_dim), dtype=jnp.float32)

    params = init_mlp_params(k_params, mlp_dim)

    reward = image_reward_forward(emb_better, emb_worse, emb_source, params)
    jax.block_until_ready(reward)

    # Pure-JAX reference of the ORIGINAL (unfolded) 5-layer MLP forward.
    def ref_mlp(x):
        h = x
        for i in range(5):
            h = h @ params[2 * i] + params[2 * i + 1]
        return h

    ref = jnp.concatenate(
        [ref_mlp(jnp.concatenate([emb_better, emb_source], axis=1)),
         ref_mlp(jnp.concatenate([emb_worse, emb_source], axis=1))],
        axis=1,
    )
    assert reward.shape == (B, 2)
    assert jnp.allclose(reward, ref, atol=1e-5, rtol=1e-4), (
        f"max abs err {jnp.max(jnp.abs(reward - ref))}")

    print("KERNEL_OK")
</pallas_src>

<mosaic_0001>
module attributes {stable_mosaic.version = 11 : i64} {
  func.func @_reward_head_kernel(%arg0: i32, %arg1: memref<2x32xf32, #tpu.memory_space<vmem>>, %arg2: memref<2x32xf32, #tpu.memory_space<vmem>>, %arg3: memref<2x32xf32, #tpu.memory_space<vmem>>, %arg4: memref<32x1xf32, #tpu.memory_space<vmem>>, %arg5: memref<32x1xf32, #tpu.memory_space<vmem>>, %arg6: memref<1x1xf32, #tpu.memory_space<vmem>>, %arg7: memref<2x2xf32, #tpu.memory_space<vmem>>) attributes {dimension_semantics = [#tpu.dimension_semantics<parallel>], iteration_bounds = array<i64: 1>, scalar_prefetch = 0 : i64, scratch_operands = 0 : i64, tpu.core_type = #tpu.core_type<tc>, window_params = [{transform_indices = @transform_0, window_bounds = array<i64: 2, 32>}, {transform_indices = @transform_1, window_bounds = array<i64: 2, 32>}, {transform_indices = @transform_2, window_bounds = array<i64: 2, 32>}, {pipeline_mode = #tpu.pipeline_mode<synchronous>, transform_indices = @transform_3, window_bounds = array<i64: 32, 1>}, {pipeline_mode = #tpu.pipeline_mode<synchronous>, transform_indices = @transform_4, window_bounds = array<i64: 32, 1>}, {pipeline_mode = #tpu.pipeline_mode<synchronous>, transform_indices = @transform_5, window_bounds = array<i64: 1, 1>}, {transform_indices = @transform_6, window_bounds = array<i64: 2, 2>}]} {
    %c0 = arith.constant 0 : index
    %c0_0 = arith.constant 0 : index
    %0 = vector.load %arg3[%c0, %c0_0] : memref<2x32xf32, #tpu.memory_space<vmem>>, vector<2x32xf32>
    %c0_1 = arith.constant 0 : index
    %c0_2 = arith.constant 0 : index
    %1 = vector.load %arg5[%c0_1, %c0_2] : memref<32x1xf32, #tpu.memory_space<vmem>>, vector<32x1xf32>
    %cst = arith.constant dense<0.000000e+00> : vector<2x1xf32>
    %2 = tpu.matmul %0, %1, %cst {dimension_numbers = #tpu.dot_dimension_numbers<[1], [0], [0], [1], [0, 0, 1, 1], [], []>} : vector<2x32xf32>, vector<32x1xf32>, vector<2x1xf32> -> vector<2x1xf32>
    %c0_3 = arith.constant 0 : index
    %c0_4 = arith.constant 0 : index
    %3 = vector.load %arg6[%c0_3, %c0_4] : memref<1x1xf32, #tpu.memory_space<vmem>>, vector<1x1xf32>
    %4 = vector.broadcast %3 : vector<1x1xf32> to vector<2x1xf32>
    %5 = arith.addf %2, %4 : vector<2x1xf32>
    %c0_5 = arith.constant 0 : index
    %c0_6 = arith.constant 0 : index
    %6 = vector.load %arg1[%c0_5, %c0_6] : memref<2x32xf32, #tpu.memory_space<vmem>>, vector<2x32xf32>
    %c0_7 = arith.constant 0 : index
    %c0_8 = arith.constant 0 : index
    %7 = vector.load %arg4[%c0_7, %c0_8] : memref<32x1xf32, #tpu.memory_space<vmem>>, vector<32x1xf32>
    %cst_9 = arith.constant dense<0.000000e+00> : vector<2x1xf32>
    %8 = tpu.matmul %6, %7, %cst_9 {dimension_numbers = #tpu.dot_dimension_numbers<[1], [0], [0], [1], [0, 0, 1, 1], [], []>} : vector<2x32xf32>, vector<32x1xf32>, vector<2x1xf32> -> vector<2x1xf32>
    %9 = arith.addf %8, %5 : vector<2x1xf32>
    %c0_10 = arith.constant 0 : index
    %c0_11 = arith.constant 0 : index
    %10 = vector.load %arg2[%c0_10, %c0_11] : memref<2x32xf32, #tpu.memory_space<vmem>>, vector<2x32xf32>
    %c0_12 = arith.constant 0 : index
    %c0_13 = arith.constant 0 : index
    %11 = vector.load %arg4[%c0_12, %c0_13] : memref<32x1xf32, #tpu.memory_space<vmem>>, vector<32x1xf32>
    %cst_14 = arith.constant dense<0.000000e+00> : vector<2x1xf32>
    %12 = tpu.matmul %10, %11, %cst_14 {dimension_numbers = #tpu.dot_dimension_numbers<[1], [0], [0], [1], [0, 0, 1, 1], [], []>} : vector<2x32xf32>, vector<32x1xf32>, vector<2x1xf32> -> vector<2x1xf32>
    %13 = arith.addf %12, %5 : vector<2x1xf32>
    %14 = tpu.concatenate %9, %13 in 1 : vector<2x1xf32>, vector<2x1xf32> -> vector<2x2xf32>
    %c0_15 = arith.constant 0 : index
    %c0_16 = arith.constant 0 : index
    %15 = vector.load %arg7[%c0_15, %c0_16] : memref<2x2xf32, #tpu.memory_space<vmem>>, vector<2x2xf32>
    tpu.vector_store %arg7[%c0_15, %c0_16], %14 {strides = array<i32>} : memref<2x2xf32, #tpu.memory_space<vmem>>, vector<2x2xf32>,
    return
  }
  func.func @transform_0(%arg0: i32) -> (i32, i32) {
    %c0_i32 = arith.constant 0 : i32
    %c0_i32_0 = arith.constant 0 : i32
    return %arg0, %c0_i32 : i32, i32
  }
  func.func @transform_1(%arg0: i32) -> (i32, i32) {
    %c0_i32 = arith.constant 0 : i32
    %c0_i32_0 = arith.constant 0 : i32
    return %arg0, %c0_i32 : i32, i32
  }
  func.func @transform_2(%arg0: i32) -> (i32, i32) {
    %c0_i32 = arith.constant 0 : i32
    %c0_i32_0 = arith.constant 0 : i32
    return %arg0, %c0_i32 : i32, i32
  }
  func.func @transform_3(%arg0: i32) -> (i32, i32) {
    %c0_i32 = arith.constant 0 : i32
    %c0_i32_0 = arith.constant 0 : i32
    %c0_i32_1 = arith.constant 0 : i32
    return %c0_i32, %c0_i32_0 : i32, i32
  }
  func.func @transform_4(%arg0: i32) -> (i32, i32) {
    %c0_i32 = arith.constant 0 : i32
    %c0_i32_0 = arith.constant 0 : i32
    %c0_i32_1 = arith.constant 0 : i32
    return %c0_i32, %c0_i32_0 : i32, i32
  }
  func.func @transform_5(%arg0: i32) -> (i32, i32) {
    %c0_i32 = arith.constant 0 : i32
    %c0_i32_0 = arith.constant 0 : i32
    %c0_i32_1 = arith.constant 0 : i32
    return %c0_i32, %c0_i32_0 : i32, i32
  }
  func.func @transform_6(%arg0: i32) -> (i32, i32) {
    %c0_i32 = arith.constant 0 : i32
    %c0_i32_0 = arith.constant 0 : i32
    return %arg0, %c0_i32 : i32, i32
  }
}

</mosaic_0001>

<bundles_post_ra>
// kernel: tpu_custom_call.1
= control target key start
LH: loop header
LB: loop body
LE: loop exit
PB: predicated region body
PF: predicated region fallthrough
CT: control target
= control target key end

     0   :  { %s243_s0 = inlined_call_operand.vmem [shape: f32[2,32], index: 0, kind: input, shape index: {}]   ;;  %s244_s1 = inlined_call_operand.vmem [shape: f32[2,32], index: 1, kind: input, shape index: {}]   ;;  %s245_s2 = inlined_call_operand.vmem [shape: f32[2,32], index: 2, kind: input, shape index: {}]   ;;  %s246_s3 = inlined_call_operand.vmem [shape: f32[32,1], index: 3, kind: input, shape index: {}]   ;;  %s247_s4 = inlined_call_operand.vmem [shape: f32[32,1], index: 4, kind: input, shape index: {}]   ;;  %s248_s5 = inlined_call_operand.<no memory space> [shape: f32[1,1], index: 5, kind: input, shape index: {}]   ;;  %s249_s6 = inlined_call_operand.hbm [shape: f32[2,2], index: 6, kind: output, shape index: {}]  }
   0x1   :  { %v11_v0 = vstv %s248_s5 }
   0x2   :  { %12 = vst [vmem:[#allocation2] sm:$0x1] %v11_v0 }
   0x3   :  { %v63_v1 = vld [vmem:[%s246_s3 + $0x18] sm:$0xff]  ;;  %v62_v2 = vld [vmem:[%s246_s3 + $0x10] sm:$0xff]  ;;  %v61_v5 = vld [vmem:[%s246_s3 + $0x8] sm:$0xff] }
   0x4   :  { %v30_v3 = vld [vmem:[%s247_s4 + $0x18] sm:$0xff]  ;;  %103 = vmatpush.msra.mxu2 %v63_v1  ;;  %v29_v4 = vld [vmem:[%s247_s4 + $0x10] sm:$0xff]  ;;  %79 = vmatpush.msra.mxu1 %v63_v1  ;;  %v28_v6 = vld [vmem:[%s247_s4 + $0x8] sm:$0xff] }
   0x5   :  { %51 = vmatpush.msra.mxu0 %v30_v3  ;;  %v60_v7 = vld [vmem:[%s246_s3] sm:$0xff] }
   0x6   :  { %104 = vmatpush.msra.mxu2 %v62_v2  ;;  %80 = vmatpush.msra.mxu1 %v62_v2  ;;  %v27_v8 = vld [vmem:[%s247_s4] sm:$0xff] }
   0x7   :  { %52 = vmatpush.msra.mxu0 %v29_v4 }
   0x8   :  { %13 = vsyncpa [#allocation4], 0  ;;  %105 = vmatpush.msra.mxu2 %v61_v5  ;;  %vm35_vm0 = vcmask 261120   ;;  %v87_v9 = vld [vmem:[%s244_s1] sm:$0x3]  ;;  %81 = vmatpush.msra.mxu1 %v61_v5  ;;  %s167_s1 = smov 1  }
   0x9   :  { %53 = vmatpush.msra.mxu0 %v28_v6  ;;  %v26_v10 = vld [vmem:[%s245_s2] sm:$0x3]  ;;  %s168_s2 = smov [#allocation3]   ;;  %s126_s21 = sshll.u32 %s249_s6, 4  ;;  %vm115_vm1 = vcmask 7168   ;;  %vm117_vm2 = vcmask 9216   ;;  %s127_s21 = int_to_ptr.hbm [resolvable:$true] %s126_s21 }
   0xa   :  { %106 = vmatpush.msra.mxu2 %v60_v7  ;;  %v59_v11 = vld [vmem:[%s243_s0] sm:$0x3]  ;;  %82 = vmatpush.msra.mxu1 %v60_v7  ;;  %s124_s4 = sshll.u32 %s168_s2, 4  ;;  %s125_s4 = int_to_ptr.vmem [resolvable:$true] %s124_s4 }
   0xb   :  { %54 = vmatpush.msra.mxu0 %v27_v8  ;;  %137 = vmatmul.msk.f32.vlgmr.msra.gmra.mxu2 %vm35_vm0, %v87_v9  ;;  %v140_v12 = vld [vmem:[#allocation2] ss:$0 sm:$0xff] }
   0xc   :  { %135 = vmatmul.msk.f32.vlgmr.msra.gmra.mxu0 %vm35_vm0, %v26_v10  ;;  %136 = vmatmul.msk.f32.vlgmr.msra.gmra.mxu1 %vm35_vm0, %v59_v11 }
  0x89   :  { %v56_v13 = vpop.f32.mrf.mxu0  ;;  %v84_v17 = vpop.f32.mrf.mxu1 }
  0x8a   :  { %v57_v14 = vadd.f32 %v140_v12, %v56_v13 }
  0x8c   :  { %v85_v18 = vadd.f32 %v84_v17, %v57_v14 }
  0x8e   :  { %v108_v15 = vpop.f32.mrf.mxu2 }
  0x8f   :  { %v109_v16 = vadd.f32 %v108_v15, %v57_v14 }
  0x91   :  { %112 = vrot.lane.b32.xlu0 %v109_v16, %s167_s1 }
 0x103   :  { %v113_v19 = vpop.permute.xlu0 %112 }
 0x104   :  { %v116_v20 = vsel %vm115_vm1, %v85_v18, %v113_v19 }
 0x105   :  { %118 = vst.msk [vmem:[#allocation3] sm:$0x3] %vm117_vm2, %v116_v20 }
 0x106   :  { %129 = dma.vmem_to_hbm [thread:$0]  %s125_s4, 32, %s127_s21, [#allocation4]  }
 0x107   :  { %165 = dma.done.wait [#allocation4], 32  }
 0x108   :  { %166 = vsyncadd [#allocation4], 4294967264 }
 0x109   :  { %134 = vsyncpa [#allocation4], 1 }

</bundles_post_ra>
